<compile_context>
chip_gen: v7x
topology: tpu7x:2x2x1
jax: 0.10.0
libtpu: 0.0.40
codegen_flags: <defaults>
</compile_context>

<pallas_src>
import functools

import jax
import jax.numpy as jnp
from jax import lax
from jax.experimental import pallas as pl
from jax.experimental.pallas import tpu as pltpu


def _round_up(x: int, m: int) -> int:
    return ((x + m - 1) // m) * m


# ---------------------------------------------------------------------------
# Fused kernel: encoder -> L2 normalize -> decoder, all in one grid step.
# ---------------------------------------------------------------------------
def _fused_autoencoder_kernel(x_ref, *refs, n_enc: int, matmul_dtype):
    """refs = (w_0, ..., w_{L-1}, bias_ref, out_ref).

    Each w_i is a lane-padded [Din_p, Dout_p] VMEM-resident block.  bias_ref is
    a single [L_pad, Dmax_p] f32 block holding all (zero-padded) biases.
    """
    out_ref = refs[-1]
    bias_ref = refs[-2]
    w_refs = refs[:-2]
    n_layers = len(w_refs)

    h = x_ref[...].astype(jnp.float32)

    for i in range(n_layers):
        dout_p = w_refs[i].shape[1]
        lhs = h.astype(matmul_dtype)
        rhs = w_refs[i][...].astype(matmul_dtype)   # no-op if already bf16
        b = bias_ref[i:i + 1, :dout_p]              # [1, Dout_p] f32 -> broadcast
        h = jnp.dot(lhs, rhs, preferred_element_type=jnp.float32) + b

        if i == n_enc - 1:
            # F.normalize(h, p=2, dim=1, eps=1e-12) == h / max(||h||, 1e-12)
            #   == h * rsqrt(max(sum(h^2), 1e-24))  -- one EUP rsqrt per row.
            sumsq = jnp.sum(h * h, axis=1, keepdims=True)
            h = h * lax.rsqrt(jnp.maximum(sumsq, 1e-24))
        elif i != n_layers - 1:
            h = jnp.maximum(h, 0.0)                 # ReLU

    out_ref[...] = h.astype(out_ref.dtype)


# ---------------------------------------------------------------------------
# Wrapper: single pallas_call for the whole forward pass.
# ---------------------------------------------------------------------------
def autoencoder_forward(x, enc_params, dec_params, *,
                        batch_block=256, matmul_dtype=jnp.bfloat16):
    """Fused forward.  matmul_dtype=bfloat16 feeds the MXU its native input
    dtype (f32 accumulation); pass jnp.float32 for bit-accurate matmuls."""
    B, Din = x.shape
    n_enc = len(enc_params)
    layers = list(enc_params) + list(dec_params)
    n_layers = len(layers)
    Dout = layers[-1][0].shape[1]

    mm_dtype = jnp.dtype(matmul_dtype)
    w_dtype = jnp.float32 if mm_dtype == jnp.dtype(jnp.float32) else mm_dtype

    # ---- pad every feature dim to a multiple of 128 (lane-dense) -----------
    # Padded input lanes multiply zero weight rows; padded output lanes have
    # zero weight columns and zero bias, so they stay exactly 0 through ReLU
    # and the L2 normalize and are sliced off at the end.
    dins = [w.shape[0] for w, _ in layers]
    douts = [w.shape[1] for w, _ in layers]
    dins_p = [_round_up(d, 128) for d in dins]
    douts_p = [_round_up(d, 128) for d in douts]
    Din_p, Dout_p = dins_p[0], douts_p[-1]
    max_dp = max(douts_p + [Din_p])

    padded_ws = []
    for li, (w, _) in enumerate(layers):
        wp = jnp.zeros((dins_p[li], douts_p[li]), jnp.float32)
        wp = wp.at[:w.shape[0], :w.shape[1]].set(w)
        padded_ws.append(wp.astype(w_dtype))

    # All biases in one padded VMEM-resident buffer (1 DMA instead of n_layers)
    bias_arr = jnp.zeros((_round_up(n_layers, 8), max_dp), jnp.float32)
    for li, (_, b) in enumerate(layers):
        bias_arr = bias_arr.at[li, :b.shape[0]].set(b.astype(jnp.float32))

    param_bytes = (sum(int(w.size) * w.dtype.itemsize for w in padded_ws)
                   + int(bias_arr.size) * bias_arr.dtype.itemsize)

    # ---- batch tiling -------------------------------------------------------
    try:
        vmem_cap = int(pltpu.get_tpu_info().vmem_capacity_bytes)
    except Exception:
        vmem_cap = 64 * 1024 * 1024          # v7x per-core VMEM (smallest gen)

    B8 = _round_up(B, 8)
    bm = _round_up(min(batch_block, B8), 8)
    # v7x megacore: give the "parallel" batch axis >= 2 grid steps whenever the
    # batch allows so both TensorCores get work (no-op on v5e/v6e: single TC).
    if B8 >= 16 and pl.cdiv(B8, bm) < 2:
        bm = _round_up(pl.cdiv(B8, 2), 8)
    # Keep resident weights (x2 for pipelining) + widest intermediate (+ spill
    # headroom) inside the VMEM budget; matters on v7x for DEC-scale layers.
    while bm > 8 and 2 * param_bytes + 8 * bm * max_dp * 4 > int(0.75 * vmem_cap):
        bm = max(8, _round_up(bm // 2, 8))

    B_pad = _round_up(B8, bm)
    grid = (B_pad // bm,)

    x_p = jnp.zeros((B_pad, Din_p), x.dtype).at[:B, :Din].set(x)

    # ---- specs --------------------------------------------------------------
    # Weights/bias buffer: whole-array blocks, constant index_map -> fetched
    # once, VMEM-resident across batch grid steps.
    in_specs = [pl.BlockSpec((bm, Din_p), lambda i: (i, 0))]
    for wp in padded_ws:
        in_specs.append(pl.BlockSpec(wp.shape, lambda i: (0, 0)))
    in_specs.append(pl.BlockSpec(bias_arr.shape, lambda i: (0, 0)))
    out_specs = pl.BlockSpec((bm, Dout_p), lambda i: (i, 0))

    itemsize = jnp.dtype(x.dtype).itemsize
    flops = 2 * B_pad * sum(di * do for di, do in zip(dins_p, douts_p))
    bytes_accessed = (B_pad * Din_p * itemsize + param_bytes
                      + B_pad * Dout_p * itemsize)

    vmem_limit = (2 * param_bytes
                  + 2 * bm * (Din_p + Dout_p) * itemsize
                  + 8 * bm * max_dp * 4
                  + (4 << 20))
    vmem_limit = int(min(max(vmem_limit, 32 << 20), int(0.9 * vmem_cap)))

    kernel = functools.partial(_fused_autoencoder_kernel,
                               n_enc=n_enc, matmul_dtype=mm_dtype)

    out = pl.pallas_call(
        kernel,
        out_shape=jax.ShapeDtypeStruct((B_pad, Dout_p), x.dtype),
        grid=grid,
        in_specs=in_specs,
        out_specs=out_specs,
        compiler_params=pltpu.CompilerParams(
            dimension_semantics=("parallel",),
            vmem_limit_bytes=vmem_limit,
        ),
        cost_estimate=pl.CostEstimate(
            flops=flops, transcendentals=B_pad, bytes_accessed=bytes_accessed),
    )(x_p, *padded_ws, bias_arr)

    return out[:B, :Dout]


# ---------------------------------------------------------------------------
# Params init (mirrors the torch module's layer shapes) + plain-JAX reference.
# ---------------------------------------------------------------------------
def init_autoencoder_params(key, dims):
    """encoder layer i: Linear(dims[i] -> dims[i+1]);
    decoder layer j (j = reversed(range(len(dims)-1))): Linear(dims[j+1]->dims[j]).
    Weights stored [in, out]; init ~ U(-1/sqrt(fan_in), 1/sqrt(fan_in))."""
    def make_linear(k, din, dout):
        kw, kb = jax.random.split(k)
        bound = 1.0 / jnp.sqrt(jnp.float32(din))
        w = jax.random.uniform(kw, (din, dout), jnp.float32, -bound, bound)
        b = jax.random.uniform(kb, (dout,), jnp.float32, -bound, bound)
        return w, b

    n = len(dims) - 1
    keys = jax.random.split(key, 2 * n)
    enc = [make_linear(keys[i], dims[i], dims[i + 1]) for i in range(n)]
    dec = [make_linear(keys[n + idx], dims[j + 1], dims[j])
           for idx, j in enumerate(reversed(range(n)))]
    return enc, dec


def reference_forward(x, enc_params, dec_params):
    n_enc = len(enc_params)
    h = x
    for i, (w, b) in enumerate(enc_params):
        h = h @ w + b
        if i != n_enc - 1:
            h = jnp.maximum(h, 0.0)
    norm = jnp.sqrt(jnp.sum(h * h, axis=1, keepdims=True))
    h = h / jnp.maximum(norm, 1e-12)
    n_dec = len(dec_params)
    for i, (w, b) in enumerate(dec_params):
        h = h @ w + b
        if i != n_dec - 1:
            h = jnp.maximum(h, 0.0)
    return h


if __name__ == "__main__":
    dims = [32, 64, 16]          # DEC-style dims: 32 -> 64 -> 16 -> 64 -> 32
    batch = 8

    key = jax.random.PRNGKey(0)
    k_params, k_x = jax.random.split(key)
    enc_params, dec_params = init_autoencoder_params(k_params, dims)
    x = jax.random.normal(k_x, (batch, dims[0]), jnp.float32)

    ref = reference_forward(x, enc_params, dec_params)

    # 1) f32 MXU path: tight check against the plain-JAX reference.
    out_f32 = autoencoder_forward(x, enc_params, dec_params,
                                  matmul_dtype=jnp.float32)
    out_f32 = jax.block_until_ready(out_f32)
    assert out_f32.shape == (batch, dims[0])
    assert jnp.allclose(out_f32, ref, atol=1e-4, rtol=1e-4), "f32 mismatch"

    # 2) bf16 MXU path (default fast path on v5e/v6e/v7x): looser tolerance.
    out_bf16 = autoencoder_forward(x, enc_params, dec_params)
    out_bf16 = jax.block_until_ready(out_bf16)
    assert out_bf16.shape == (batch, dims[0])
    assert jnp.allclose(out_bf16, ref, atol=5e-2, rtol=5e-2), "bf16 mismatch"

    print("KERNEL_OK")
</pallas_src>

<mosaic_0001>
module attributes {stable_mosaic.version = 11 : i64} {
  func.func @_fused_autoencoder_kernel(%arg0: i32, %arg1: memref<8x128xf32, #tpu.memory_space<vmem>>, %arg2: memref<128x128xf32, #tpu.memory_space<vmem>>, %arg3: memref<128x128xf32, #tpu.memory_space<vmem>>, %arg4: memref<128x128xf32, #tpu.memory_space<vmem>>, %arg5: memref<128x128xf32, #tpu.memory_space<vmem>>, %arg6: memref<8x128xf32, #tpu.memory_space<vmem>>, %arg7: memref<8x128xf32, #tpu.memory_space<vmem>>) attributes {dimension_semantics = [#tpu.dimension_semantics<parallel>], iteration_bounds = array<i64: 1>, scalar_prefetch = 0 : i64, scratch_operands = 0 : i64, tpu.core_type = #tpu.core_type<tc>, window_params = [{transform_indices = @transform_0, window_bounds = array<i64: 8, 128>}, {pipeline_mode = #tpu.pipeline_mode<synchronous>, transform_indices = @transform_1, window_bounds = array<i64: 128, 128>}, {pipeline_mode = #tpu.pipeline_mode<synchronous>, transform_indices = @transform_2, window_bounds = array<i64: 128, 128>}, {pipeline_mode = #tpu.pipeline_mode<synchronous>, transform_indices = @transform_3, window_bounds = array<i64: 128, 128>}, {pipeline_mode = #tpu.pipeline_mode<synchronous>, transform_indices = @transform_4, window_bounds = array<i64: 128, 128>}, {pipeline_mode = #tpu.pipeline_mode<synchronous>, transform_indices = @transform_5, window_bounds = array<i64: 8, 128>}, {transform_indices = @transform_6, window_bounds = array<i64: 8, 128>}]} {
    %c0 = arith.constant 0 : index
    %c0_0 = arith.constant 0 : index
    %0 = vector.load %arg1[%c0, %c0_0] : memref<8x128xf32, #tpu.memory_space<vmem>>, vector<8x128xf32>
    %c0_1 = arith.constant 0 : index
    %c0_2 = arith.constant 0 : index
    %1 = vector.load %arg2[%c0_1, %c0_2] : memref<128x128xf32, #tpu.memory_space<vmem>>, vector<128x128xf32>
    %c0_3 = arith.constant 0 : index
    %c0_4 = arith.constant 0 : index
    %2 = vector.load %arg6[%c0_3, %c0_4] : memref<8x128xf32, #tpu.memory_space<vmem>>, vector<1x128xf32>
    %cst = arith.constant dense<0.000000e+00> : vector<8x128xf32>
    %3 = tpu.matmul %0, %1, %cst {dimension_numbers = #tpu.dot_dimension_numbers<[1], [0], [0], [1], [0, 0, 1, 1], [], []>} : vector<8x128xf32>, vector<128x128xf32>, vector<8x128xf32> -> vector<8x128xf32>
    %4 = vector.broadcast %2 : vector<1x128xf32> to vector<8x128xf32>
    %5 = arith.addf %3, %4 : vector<8x128xf32>
    %cst_5 = arith.constant 0.000000e+00 : f32
    %6 = vector.broadcast %cst_5 : f32 to vector<8x128xf32>
    %7 = arith.maximumf %5, %6 : vector<8x128xf32>
    %c0_6 = arith.constant 0 : index
    %c0_7 = arith.constant 0 : index
    %8 = vector.load %arg3[%c0_6, %c0_7] : memref<128x128xf32, #tpu.memory_space<vmem>>, vector<128x128xf32>
    %c1 = arith.constant 1 : index
    %c0_8 = arith.constant 0 : index
    %9 = vector.load %arg6[%c1, %c0_8] : memref<8x128xf32, #tpu.memory_space<vmem>>, vector<1x128xf32>
    %cst_9 = arith.constant dense<0.000000e+00> : vector<8x128xf32>
    %10 = tpu.matmul %7, %8, %cst_9 {dimension_numbers = #tpu.dot_dimension_numbers<[1], [0], [0], [1], [0, 0, 1, 1], [], []>} : vector<8x128xf32>, vector<128x128xf32>, vector<8x128xf32> -> vector<8x128xf32>
    %11 = vector.broadcast %9 : vector<1x128xf32> to vector<8x128xf32>
    %12 = arith.addf %10, %11 : vector<8x128xf32>
    %13 = arith.mulf %12, %12 : vector<8x128xf32>
    %cst_10 = arith.constant dense<0.000000e+00> : vector<8xf32>
    %14 = vector.multi_reduction <add>, %13, %cst_10 [1] : vector<8x128xf32> to vector<8xf32>
    %15 = vector.shape_cast %14 : vector<8xf32> to vector<8x1xf32>
    %cst_11 = arith.constant 1.000000e-24 : f32
    %16 = vector.broadcast %cst_11 : f32 to vector<8x1xf32>
    %17 = arith.maximumf %15, %16 : vector<8x1xf32>
    %18 = math.rsqrt %17 : vector<8x1xf32>
    %19 = vector.broadcast %18 : vector<8x1xf32> to vector<8x128xf32>
    %20 = arith.mulf %12, %19 : vector<8x128xf32>
    %c0_12 = arith.constant 0 : index
    %c0_13 = arith.constant 0 : index
    %21 = vector.load %arg4[%c0_12, %c0_13] : memref<128x128xf32, #tpu.memory_space<vmem>>, vector<128x128xf32>
    %c2 = arith.constant 2 : index
    %c0_14 = arith.constant 0 : index
    %22 = vector.load %arg6[%c2, %c0_14] : memref<8x128xf32, #tpu.memory_space<vmem>>, vector<1x128xf32>
    %cst_15 = arith.constant dense<0.000000e+00> : vector<8x128xf32>
    %23 = tpu.matmul %20, %21, %cst_15 {dimension_numbers = #tpu.dot_dimension_numbers<[1], [0], [0], [1], [0, 0, 1, 1], [], []>} : vector<8x128xf32>, vector<128x128xf32>, vector<8x128xf32> -> vector<8x128xf32>
    %24 = vector.broadcast %22 : vector<1x128xf32> to vector<8x128xf32>
    %25 = arith.addf %23, %24 : vector<8x128xf32>
    %cst_16 = arith.constant 0.000000e+00 : f32
    %26 = vector.broadcast %cst_16 : f32 to vector<8x128xf32>
    %27 = arith.maximumf %25, %26 : vector<8x128xf32>
    %c0_17 = arith.constant 0 : index
    %c0_18 = arith.constant 0 : index
    %28 = vector.load %arg5[%c0_17, %c0_18] : memref<128x128xf32, #tpu.memory_space<vmem>>, vector<128x128xf32>
    %c3 = arith.constant 3 : index
    %c0_19 = arith.constant 0 : index
    %29 = vector.load %arg6[%c3, %c0_19] : memref<8x128xf32, #tpu.memory_space<vmem>>, vector<1x128xf32>
    %cst_20 = arith.constant dense<0.000000e+00> : vector<8x128xf32>
    %30 = tpu.matmul %27, %28, %cst_20 {dimension_numbers = #tpu.dot_dimension_numbers<[1], [0], [0], [1], [0, 0, 1, 1], [], []>} : vector<8x128xf32>, vector<128x128xf32>, vector<8x128xf32> -> vector<8x128xf32>
    %31 = vector.broadcast %29 : vector<1x128xf32> to vector<8x128xf32>
    %32 = arith.addf %30, %31 : vector<8x128xf32>
    %c0_21 = arith.constant 0 : index
    %c0_22 = arith.constant 0 : index
    %33 = vector.load %arg7[%c0_21, %c0_22] : memref<8x128xf32, #tpu.memory_space<vmem>>, vector<8x128xf32>
    tpu.vector_store %arg7[%c0_21, %c0_22], %32 {strides = array<i32>} : memref<8x128xf32, #tpu.memory_space<vmem>>, vector<8x128xf32>,
    return
  }
  func.func @transform_0(%arg0: i32) -> (i32, i32) {
    %c0_i32 = arith.constant 0 : i32
    %c0_i32_0 = arith.constant 0 : i32
    return %arg0, %c0_i32 : i32, i32
  }
  func.func @transform_1(%arg0: i32) -> (i32, i32) {
    %c0_i32 = arith.constant 0 : i32
    %c0_i32_0 = arith.constant 0 : i32
    %c0_i32_1 = arith.constant 0 : i32
    return %c0_i32, %c0_i32_0 : i32, i32
  }
  func.func @transform_2(%arg0: i32) -> (i32, i32) {
    %c0_i32 = arith.constant 0 : i32
    %c0_i32_0 = arith.constant 0 : i32
    %c0_i32_1 = arith.constant 0 : i32
    return %c0_i32, %c0_i32_0 : i32, i32
  }
  func.func @transform_3(%arg0: i32) -> (i32, i32) {
    %c0_i32 = arith.constant 0 : i32
    %c0_i32_0 = arith.constant 0 : i32
    %c0_i32_1 = arith.constant 0 : i32
    return %c0_i32, %c0_i32_0 : i32, i32
  }
  func.func @transform_4(%arg0: i32) -> (i32, i32) {
    %c0_i32 = arith.constant 0 : i32
    %c0_i32_0 = arith.constant 0 : i32
    %c0_i32_1 = arith.constant 0 : i32
    return %c0_i32, %c0_i32_0 : i32, i32
  }
  func.func @transform_5(%arg0: i32) -> (i32, i32) {
    %c0_i32 = arith.constant 0 : i32
    %c0_i32_0 = arith.constant 0 : i32
    %c0_i32_1 = arith.constant 0 : i32
    return %c0_i32, %c0_i32_0 : i32, i32
  }
  func.func @transform_6(%arg0: i32) -> (i32, i32) {
    %c0_i32 = arith.constant 0 : i32
    %c0_i32_0 = arith.constant 0 : i32
    return %arg0, %c0_i32 : i32, i32
  }
}

</mosaic_0001>

<bundles_post_ra>
// kernel: tpu_custom_call.1
= control target key start
LH: loop header
LB: loop body
LE: loop exit
PB: predicated region body
PF: predicated region fallthrough
CT: control target
= control target key end

     0   :  { %11 = vsyncpa [#allocation3], 0  ;;  %s1124_s0 = inlined_call_operand.hbm [shape: f32[8,128], index: 0, kind: input, shape index: {}]   ;;  %s1125_s1 = inlined_call_operand.hbm [shape: f32[128,128], index: 1, kind: input, shape index: {}]   ;;  %s1126_s2 = inlined_call_operand.hbm [shape: f32[128,128], index: 2, kind: input, shape index: {}]   ;;  %s1127_s3 = inlined_call_operand.hbm [shape: f32[128,128], index: 3, kind: input, shape index: {}]   ;;  %s1128_s4 = inlined_call_operand.hbm [shape: f32[128,128], index: 4, kind: input, shape index: {}]   ;;  %s1129_s5 = inlined_call_operand.vmem [shape: f32[8,128], index: 5, kind: input, shape index: {}]   ;;  %s1130_s6 = inlined_call_operand.hbm [shape: f32[8,128], index: 6, kind: output, shape index: {}]  }
   0x1   :  { %12 = vsyncpa [#allocation6], 0 }
   0x2   :  { %13 = vsyncpa [#allocation9], 0 }
   0x3   :  { %14 = vsyncpa [#allocation4], 0  ;;  %s942_s21 = smov [#allocation5]   ;;  %s802_s25 = scalar_lea.hbm %s1125_s1, 2048 }
   0x4   :  { %s30_s22 = sshll.u32 %s942_s21, 4  ;;  %p803_p0 = scmp.ne.s32.totalorder %s1125_s1, %s802_s25  ;;  %s31_s22 = int_to_ptr.vmem [resolvable:$true] %s30_s22 }
   0x5   :  { %p806_p1 = scmp.lt.u32.totalorder %s802_s25, %s1125_s1 }
   0x7   :  { %p808_p2 = pnand %p806_p1, %p803_p0 }
   0x9   :  { %811 = shalt.err (!%p808_p2)
}
   0xa   :  { %s812_s30 = scalar_lea.vmem %s31_s22, 2048  ;;  %p817_p4 = scmp.lt.s32.totalorder %s31_s22, %s31_s22 }
   0xb   :  { %p813_p3 = scmp.ne.s32.totalorder %s31_s22, %s812_s30  ;;  %p818_p5 = scmp.lt.s32.totalorder %s812_s30, %s812_s30 }
   0xd   :  { %p819_p6 = por %p818_p5, %p817_p4 }
   0xf   :  { %p820_p7 = pnand %p819_p6, %p813_p3 }
  0x11   :  { %823 = shalt.err (!%p820_p7)
}
  0x12   :  { %s943_s7 = smov 128   ;;  %s944_s8 = smov 8  }
  0x13   :  { %36 = dma.hbm_to_vmem [thread:$0]  %s1125_s1, 2048, %s31_s22, [#allocation6], %s943_s7, %s943_s7, %s944_s8  }
  0x14   :  { %s945_s11 = smov [#allocation8]   ;;  %s946_s13 = smov [#allocation2]  }
  0x15   :  { %s54_s12 = sshll.u32 %s945_s11, 4  ;;  %s21_s14 = sshll.u32 %s946_s13, 4  ;;  %s55_s12 = int_to_ptr.vmem [resolvable:$true] %s54_s12  ;;  %s22_s14 = int_to_ptr.vmem [resolvable:$true] %s21_s14 }
  0x16   :  { %s824_s17 = scalar_lea.hbm %s1127_s3, 2048 }
  0x17   :  { %p825_p8 = scmp.ne.s32.totalorder %s1127_s3, %s824_s17  ;;  %p828_p9 = scmp.lt.u32.totalorder %s824_s17, %s1127_s3 }
  0x19   :  { %p830_p10 = pnand %p828_p9, %p825_p8 }
  0x1b   :  { %833 = shalt.err (!%p830_p10)
}
  0x1c   :  { %s834_s1 = scalar_lea.vmem %s55_s12, 2048  ;;  %p839_p12 = scmp.lt.s32.totalorder %s55_s12, %s55_s12 }
  0x1d   :  { %p835_p11 = scmp.ne.s32.totalorder %s55_s12, %s834_s1  ;;  %p840_p13 = scmp.lt.s32.totalorder %s834_s1, %s834_s1 }
  0x1f   :  { %p841_p0 = por %p840_p13, %p839_p12 }
  0x21   :  { %p842_p1 = pnand %p841_p0, %p835_p11 }
  0x23   :  { %845 = shalt.err (!%p842_p1)
}
  0x24   :  { %60 = dma.hbm_to_vmem [thread:$0]  %s1127_s3, 2048, %s55_s12, [#allocation9], %s943_s7, %s943_s7, %s944_s8  }
  0x25   :  { %s846_s26 = scalar_lea.hbm %s1124_s0, 128 }
  0x26   :  { %p847_p2 = scmp.ne.s32.totalorder %s1124_s0, %s846_s26  ;;  %p850_p3 = scmp.lt.u32.totalorder %s846_s26, %s1124_s0 }
  0x28   :  { %p852_p4 = pnand %p850_p3, %p847_p2 }
  0x2a   :  { %855 = shalt.err (!%p852_p4)
}
  0x2b   :  { %s856_s9 = scalar_lea.vmem %s22_s14, 128  ;;  %p861_p6 = scmp.lt.s32.totalorder %s22_s14, %s22_s14 }
  0x2c   :  { %p857_p5 = scmp.ne.s32.totalorder %s22_s14, %s856_s9  ;;  %p862_p7 = scmp.lt.s32.totalorder %s856_s9, %s856_s9 }
  0x2e   :  { %p863_p8 = por %p862_p7, %p861_p6 }
  0x30   :  { %p864_p9 = pnand %p863_p8, %p857_p5 }
  0x32   :  { %867 = shalt.err (!%p864_p9)
}
  0x33   :  { %24 = dma.hbm_to_vmem [thread:$0]  %s1124_s0, 128, %s22_s14, [#allocation3]  }
  0x34   :  { %s947_s11 = smov [#allocation7]   ;;  %s948_s13 = smov [#allocation10]  }
  0x35   :  { %s42_s12 = sshll.u32 %s947_s11, 4  ;;  %s66_s15 = sshll.u32 %s948_s13, 4  ;;  %s43_s12 = int_to_ptr.vmem [resolvable:$true] %s42_s12  ;;  %s67_s15 = int_to_ptr.vmem [resolvable:$true] %s66_s15 }
  0x36   :  { %s868_s18 = scalar_lea.hbm %s1126_s2, 2048 }
  0x37   :  { %p869_p10 = scmp.ne.s32.totalorder %s1126_s2, %s868_s18  ;;  %p872_p11 = scmp.lt.u32.totalorder %s868_s18, %s1126_s2 }
  0x39   :  { %p874_p12 = pnand %p872_p11, %p869_p10 }
  0x3b   :  { %877 = shalt.err (!%p874_p12)
}
  0x3c   :  { %s878_s0 = scalar_lea.vmem %s43_s12, 2048  ;;  %p883_p0 = scmp.lt.s32.totalorder %s43_s12, %s43_s12 }
  0x3d   :  { %p879_p13 = scmp.ne.s32.totalorder %s43_s12, %s878_s0  ;;  %p884_p1 = scmp.lt.s32.totalorder %s878_s0, %s878_s0 }
  0x3f   :  { %p885_p2 = por %p884_p1, %p883_p0 }
  0x41   :  { %p886_p3 = pnand %p885_p2, %p879_p13 }
  0x43   :  { %889 = shalt.err (!%p886_p3)
}
  0x44   :  { %48 = dma.hbm_to_vmem [thread:$0]  %s1126_s2, 2048, %s43_s12, [#allocation6], %s943_s7, %s943_s7, %s944_s8  }
  0x45   :  { %s890_s25 = scalar_lea.hbm %s1128_s4, 2048 }
  0x46   :  { %p891_p4 = scmp.ne.s32.totalorder %s1128_s4, %s890_s25  ;;  %p894_p5 = scmp.lt.u32.totalorder %s890_s25, %s1128_s4 }
  0x48   :  { %p896_p6 = pnand %p894_p5, %p891_p4 }
  0x4a   :  { %899 = shalt.err (!%p896_p6)
}
  0x4b   :  { %s900_s30 = scalar_lea.vmem %s67_s15, 2048  ;;  %p905_p8 = scmp.lt.s32.totalorder %s67_s15, %s67_s15 }
  0x4c   :  { %p901_p7 = scmp.ne.s32.totalorder %s67_s15, %s900_s30  ;;  %p906_p9 = scmp.lt.s32.totalorder %s900_s30, %s900_s30 }
  0x4e   :  { %p907_p10 = por %p906_p9, %p905_p8 }
  0x50   :  { %p908_p11 = pnand %p907_p10, %p901_p7 }
  0x52   :  { %911 = shalt.err (!%p908_p11)
}
  0x53   :  { %72 = dma.hbm_to_vmem [thread:$0]  %s1128_s4, 2048, %s67_s15, [#allocation9], %s943_s7, %s943_s7, %s944_s8  }
  0x54   :  { %934 = dma.done.wait [#allocation3], 128  }
  0x55   :  { %935 = vsyncadd [#allocation3], 4294967168 }
  0x56   :  { %936 = dma.done.wait [#allocation6], 4096  }
  0x57   :  { %937 = vsyncadd [#allocation6], 4294963200 }
  0x58   :  { %938 = dma.done.wait [#allocation9], 4096  }
  0x59   :  { %939 = vsyncadd [#allocation9], 4294963200  ;;  %v949_v0 = vmov 0.0|0.0   ;;  %vm950_vm0 = vmmov 0   ;;  %v951_v1 = vmov 0.0   ;;  %v91_v2 = vld [vmem:[#allocation5] sm:$0xff] }
  0x5a   :  { %693 = vmatprep.subr.bf16.mxu0 %v949_v0  ;;  %585 = vmatprep.mubr.msk.f32.mxu0 %vm950_vm0, %v951_v1  ;;  %v92_v3 = vld [vmem:[#allocation5 + $0x8] sm:$0xff]  ;;  %v93_v4 = vld [vmem:[#allocation5 + $0x10] sm:$0xff]  ;;  %v94_v6 = vld [vmem:[#allocation5 + $0x18] sm:$0xff]  ;;  %s952_s15 = smov [#allocation11]  }
  0x5b   :  { %717 = vmatprep.subr.bf16.mxu1 %v949_v0  ;;  %620 = vmatprep.mubr.msk.f32.mxu1 %vm950_vm0, %v951_v1  ;;  %v694_v5 = vpack.c.bf16 %v92_v3, %v91_v2  ;;  %v697_v7 = vpack.c.bf16 %v94_v6, %v93_v4  ;;  %v95_v8 = vld [vmem:[#allocation5 + $0x20] sm:$0xff]  ;;  %v96_v9 = vld [vmem:[#allocation5 + $0x28] sm:$0xff]  ;;  %v185_v12 = vld [vmem:[#allocation7 + $0x10] sm:$0xff]  ;;  %s470_s16 = sshll.u32 %s952_s15, 4  ;;  %s471_s16 = int_to_ptr.vmem [resolvable:$true] %s470_s16 }
  0x5c   :  { %v183_v10 = vld [vmem:[#allocation7] sm:$0xff]  ;;  %v184_v11 = vld [vmem:[#allocation7 + $0x8] sm:$0xff]  ;;  %v186_v13 = vld [vmem:[#allocation7 + $0x18] sm:$0xff]  ;;  %v700_v14 = vpack.c.bf16 %v96_v9, %v95_v8  ;;  %s912_s17 = scalar_lea.vmem %s471_s16, 128  ;;  %p917_p13 = scmp.lt.s32.totalorder %s471_s16, %s471_s16 }
  0x5d   :  { %695 = vmatpush3.bf16.msra.mxu0 %v694_v5  ;;  %v718_v15 = vpack.c.bf16 %v184_v11, %v183_v10  ;;  %v97_v16 = vld [vmem:[#allocation5 + $0x30] sm:$0xff]  ;;  %v98_v17 = vld [vmem:[#allocation5 + $0x38] sm:$0xff]  ;;  %v721_v18 = vpack.c.bf16 %v186_v13, %v185_v12  ;;  %v187_v19 = vld [vmem:[#allocation7 + $0x20] sm:$0xff]  ;;  %p913_p12 = scmp.ne.s32.totalorder %s471_s16, %s912_s17  ;;  %p918_p0 = scmp.lt.s32.totalorder %s912_s17, %s912_s17 }
  0x5e   :  { %696 = vmatprep.subr.bf16.mxu0 %v949_v0  ;;  %v188_v20 = vld [vmem:[#allocation7 + $0x28] sm:$0xff]  ;;  %v703_v21 = vpack.c.bf16 %v98_v17, %v97_v16  ;;  %v99_v22 = vld [vmem:[#allocation5 + $0x40] sm:$0xff]  ;;  %v189_v25 = vld [vmem:[#allocation7 + $0x30] sm:$0xff] }
  0x5f   :  { %719 = vmatpush3.bf16.msra.mxu1 %v718_v15  ;;  %v100_v23 = vld [vmem:[#allocation5 + $0x48] sm:$0xff]  ;;  %v724_v24 = vpack.c.bf16 %v188_v20, %v187_v19  ;;  %v190_v26 = vld [vmem:[#allocation7 + $0x38] sm:$0xff]  ;;  %v101_v28 = vld [vmem:[#allocation5 + $0x50] sm:$0xff]  ;;  %p919_p1 = por %p918_p0, %p917_p13 }
  0x60   :  { %720 = vmatprep.subr.bf16.mxu1 %v949_v0  ;;  %v706_v27 = vpack.c.bf16 %v100_v23, %v99_v22  ;;  %v102_v29 = vld [vmem:[#allocation5 + $0x58] sm:$0xff]  ;;  %v727_v30 = vpack.c.bf16 %v190_v26, %v189_v25  ;;  %v191_v31 = vld [vmem:[#allocation7 + $0x40] sm:$0xff]  ;;  %v192_v32 = vld [vmem:[#allocation7 + $0x48] sm:$0xff] }
  0x61   :  { %698 = vmatpush3.bf16.msra.mxu0 %v697_v7  ;;  %v709_v33 = vpack.c.bf16 %v102_v29, %v101_v28  ;;  %v103_v34 = vld [vmem:[#allocation5 + $0x60] sm:$0xff]  ;;  %v104_v35 = vld [vmem:[#allocation5 + $0x68] sm:$0xff]  ;;  %v730_v36 = vpack.c.bf16 %v192_v32, %v191_v31  ;;  %v193_v37 = vld [vmem:[#allocation7 + $0x50] sm:$0xff]  ;;  %p920_p2 = pnand %p919_p1, %p913_p12 }
  0x62   :  { %699 = vmatprep.subr.bf16.mxu0 %v949_v0  ;;  %v194_v38 = vld [vmem:[#allocation7 + $0x58] sm:$0xff]  ;;  %v712_v39 = vpack.c.bf16 %v104_v35, %v103_v34  ;;  %v105_v40 = vld [vmem:[#allocation5 + $0x70] sm:$0xff]  ;;  %v195_v43 = vld [vmem:[#allocation7 + $0x60] sm:$0xff] }
  0x63   :  { %722 = vmatpush3.bf16.msra.mxu1 %v721_v18  ;;  %v106_v41 = vld [vmem:[#allocation5 + $0x78] sm:$0xff]  ;;  %v733_v42 = vpack.c.bf16 %v194_v38, %v193_v37  ;;  %v196_v44 = vld [vmem:[#allocation7 + $0x68] sm:$0xff]  ;;  %v197_v48 = vld [vmem:[#allocation7 + $0x70] sm:$0xff] }
  0x64   :  { %723 = vmatprep.subr.bf16.mxu1 %v949_v0  ;;  %v715_v45 = vpack.c.bf16 %v106_v41, %v105_v40  ;;  %v736_v46 = vpack.c.bf16 %v196_v44, %v195_v43  ;;  %v90_v47 = vld [vmem:[#allocation2] sm:$0xff]  ;;  %v280_v56 = vld [vmem:[#allocation8] sm:$0xff]  ;;  %v281_v57 = vld [vmem:[#allocation8 + $0x8] sm:$0xff] }
  0x65   :  { %701 = vmatpush3.bf16.msra.mxu0 %v700_v14  ;;  %v198_v49 = vld [vmem:[#allocation7 + $0x78] sm:$0xff]  ;;  %v282_v58 = vld [vmem:[#allocation8 + $0x10] sm:$0xff]  ;;  %v742_v59 = vpack.c.bf16 %v281_v57, %v280_v56  ;;  %v284_v62 = vld [vmem:[#allocation8 + $0x20] sm:$0xff] }
  0x66   :  { %702 = vmatprep.subr.bf16.mxu0 %v949_v0  ;;  %v739_v50 = vpack.c.bf16 %v198_v49, %v197_v48  ;;  %v481_v51 = vld [vmem:[%s1129_s5] ss:$0 sm:$0xff]  ;;  %v285_v63 = vld [vmem:[#allocation8 + $0x28] sm:$0xff]  ;;  %v286_v3 = vld [vmem:[#allocation8 + $0x30] sm:$0xff] }
  0x67   :  { %725 = vmatpush3.bf16.msra.mxu1 %v724_v24  ;;  %v283_v60 = vld [vmem:[#allocation8 + $0x18] sm:$0xff]  ;;  %v748_v2 = vpack.c.bf16 %v285_v63, %v284_v62  ;;  %v288_v10 = vld [vmem:[#allocation8 + $0x40] sm:$0xff]  ;;  %v289_v11 = vld [vmem:[#allocation8 + $0x48] sm:$0xff] }
  0x68   :  { %726 = vmatprep.subr.bf16.mxu1 %v949_v0  ;;  %v745_v61 = vpack.c.bf16 %v283_v60, %v282_v58  ;;  %v287_v4 = vld [vmem:[#allocation8 + $0x38] sm:$0xff]  ;;  %v754_v12 = vpack.c.bf16 %v289_v11, %v288_v10  ;;  %v290_v13 = vld [vmem:[#allocation8 + $0x50] sm:$0xff]  ;;  %v292_v16 = vld [vmem:[#allocation8 + $0x60] sm:$0xff] }
  0x69   :  { %704 = vmatpush3.bf16.msra.mxu0 %v703_v21  ;;  %v751_v5 = vpack.c.bf16 %v287_v4, %v286_v3  ;;  %v291_v14 = vld [vmem:[#allocation8 + $0x58] sm:$0xff]  ;;  %v293_v17 = vld [vmem:[#allocation8 + $0x68] sm:$0xff]  ;;  %v294_v19 = vld [vmem:[#allocation8 + $0x70] sm:$0xff] }
  0x6a   :  { %705 = vmatprep.subr.bf16.mxu0 %v949_v0  ;;  %v757_v15 = vpack.c.bf16 %v291_v14, %v290_v13  ;;  %v760_v18 = vpack.c.bf16 %v293_v17, %v292_v16  ;;  %v295_v20 = vld [vmem:[#allocation8 + $0x78] sm:$0xff]  ;;  %v372_v22 = vld [vmem:[#allocation10] sm:$0xff]  ;;  %v373_v23 = vld [vmem:[#allocation10 + $0x8] sm:$0xff] }
  0x6b   :  { %728 = vmatpush3.bf16.msra.mxu1 %v727_v30  ;;  %v763_v21 = vpack.c.bf16 %v295_v20, %v294_v19  ;;  %v374_v24 = vld [vmem:[#allocation10 + $0x10] sm:$0xff]  ;;  %v766_v25 = vpack.c.bf16 %v373_v23, %v372_v22  ;;  %v375_v26 = vld [vmem:[#allocation10 + $0x18] sm:$0xff]  ;;  %v376_v28 = vld [vmem:[#allocation10 + $0x20] sm:$0xff] }
  0x6c   :  { %729 = vmatprep.subr.bf16.mxu1 %v949_v0  ;;  %v377_v29 = vld [vmem:[#allocation10 + $0x28] sm:$0xff]  ;;  %v378_v31 = vld [vmem:[#allocation10 + $0x30] sm:$0xff]  ;;  %v379_v32 = vld [vmem:[#allocation10 + $0x38] sm:$0xff] }
  0x6d   :  { %707 = vmatpush3.bf16.msra.mxu0 %v706_v27  ;;  %v769_v27 = vpack.c.bf16 %v375_v26, %v374_v24  ;;  %v772_v30 = vpack.c.bf16 %v377_v29, %v376_v28  ;;  %v380_v34 = vld [vmem:[#allocation10 + $0x40] sm:$0xff]  ;;  %v381_v35 = vld [vmem:[#allocation10 + $0x48] sm:$0xff]  ;;  %v382_v37 = vld [vmem:[#allocation10 + $0x50] sm:$0xff] }
  0x6e   :  { %708 = vmatprep.subr.bf16.mxu0 %v949_v0  ;;  %v383_v38 = vld [vmem:[#allocation10 + $0x58] sm:$0xff]  ;;  %v384_v40 = vld [vmem:[#allocation10 + $0x60] sm:$0xff]  ;;  %v385_v41 = vld [vmem:[#allocation10 + $0x68] sm:$0xff] }
  0x6f   :  { %731 = vmatpush3.bf16.msra.mxu1 %v730_v36  ;;  %v778_v36 = vpack.c.bf16 %v381_v35, %v380_v34  ;;  %v387_v48 = vld [vmem:[#allocation10 + $0x78] sm:$0xff] }
  0x70   :  { %732 = vmatprep.subr.bf16.mxu1 %v949_v0 }
  0x71   :  { %710 = vmatpush3.bf16.msra.mxu0 %v709_v33  ;;  %v775_v33 = vpack.c.bf16 %v379_v32, %v378_v31 }
  0x72   :  { %711 = vmatprep.subr.bf16.mxu0 %v949_v0 }
  0x73   :  { %734 = vmatpush3.bf16.msra.mxu1 %v733_v42  ;;  %v784_v42 = vpack.c.bf16 %v385_v41, %v384_v40 }
  0x74   :  { %735 = vmatprep.subr.bf16.mxu1 %v949_v0 }
  0x75   :  { %713 = vmatpush3.bf16.msra.mxu0 %v712_v39  ;;  %v781_v39 = vpack.c.bf16 %v383_v38, %v382_v37 }
  0x76   :  { %714 = vmatprep.subr.bf16.mxu0 %v949_v0 }
  0x77   :  { %737 = vmatpush3.bf16.msra.mxu1 %v736_v46 }
  0x78   :  { %738 = vmatprep.subr.bf16.mxu1 %v949_v0 }
  0x79   :  { %716 = vmatpush3.bf16.msra.mxu0 %v715_v45 }
  0x7a   :  { %741 = vmatprep.subr.bf16.mxu0 %v949_v0 }
  0x7b   :  { %740 = vmatpush3.bf16.msra.mxu1 %v739_v50  ;;  %v483_v50 = vld [vmem:[%s1129_s5 + $0x2] ss:$0 sm:$0xff] }
  0x7c   :  { %586 = vmatmul.mubr.f32.vlgmr.msra.gmra.mrb[0].mxu0 %v90_v47  ;;  %765 = vmatprep.subr.bf16.mxu1 %v949_v0  ;;  %v386_v47 = vld [vmem:[#allocation10 + $0x70] sm:$0xff] }
  0x7d   :  { %655 = vmatprep.mubr.msk.f32.mxu0 %vm950_vm0, %v951_v1  ;;  %743 = vmatpush3.bf16.msra.mxu0 %v742_v59  ;;  %v787_v49 = vpack.c.bf16 %v387_v48, %v386_v47 }
  0x7e   :  { %744 = vmatprep.subr.bf16.mxu0 %v949_v0 }
  0x81   :  { %746 = vmatpush3.bf16.msra.mxu0 %v745_v61 }
  0x82   :  { %747 = vmatprep.subr.bf16.mxu0 %v949_v0 }
  0x85   :  { %749 = vmatpush3.bf16.msra.mxu0 %v748_v2 }
  0x86   :  { %750 = vmatprep.subr.bf16.mxu0 %v949_v0 }
  0x89   :  { %752 = vmatpush3.bf16.msra.mxu0 %v751_v5 }
  0x8a   :  { %753 = vmatprep.subr.bf16.mxu0 %v949_v0 }
  0x8d   :  { %755 = vmatpush3.bf16.msra.mxu0 %v754_v12 }
  0x8e   :  { %756 = vmatprep.subr.bf16.mxu0 %v949_v0 }
  0x91   :  { %758 = vmatpush3.bf16.msra.mxu0 %v757_v15 }
  0x92   :  { %759 = vmatprep.subr.bf16.mxu0 %v949_v0 }
  0x95   :  { %761 = vmatpush3.bf16.msra.mxu0 %v760_v18 }
  0x96   :  { %762 = vmatprep.subr.bf16.mxu0 %v949_v0 }
  0x99   :  { %764 = vmatpush3.bf16.msra.mxu0 %v763_v21 }
 0x14f   :  { %v178_v52 = vpop.f32.mrb[0].mxu0 }
 0x150   :  { %v179_v53 = vadd.f32 %v481_v51, %v178_v52  ;;  %v587_v54 = vpop.f32.mrb[1].mxu0 }
 0x152   :  { %v182_v55 = vmax.f32 %v179_v53, 0.0 }
 0x154   :  { %621 = vmatmul.mubr.f32.vlgmr.msra.gmra.mrb[0].mxu1 %v182_v55 }
 0x155   :  { %690 = vmatprep.mubr.msk.f32.mxu1 %vm950_vm0, %v951_v1  ;;  %v482_v1 = vld [vmem:[%s1129_s5 + $0x1] ss:$0 sm:$0xff]  ;;  %767 = vmatpush3.bf16.msra.mxu1 %v766_v25 }
 0x156   :  { %768 = vmatprep.subr.bf16.mxu1 %v949_v0 }
 0x159   :  { %770 = vmatpush3.bf16.msra.mxu1 %v769_v27 }
 0x15a   :  { %771 = vmatprep.subr.bf16.mxu1 %v949_v0 }
 0x15d   :  { %773 = vmatpush3.bf16.msra.mxu1 %v772_v30 }
 0x15e   :  { %774 = vmatprep.subr.bf16.mxu1 %v949_v0 }
 0x161   :  { %776 = vmatpush3.bf16.msra.mxu1 %v775_v33 }
 0x162   :  { %777 = vmatprep.subr.bf16.mxu1 %v949_v0 }
 0x165   :  { %779 = vmatpush3.bf16.msra.mxu1 %v778_v36 }
 0x166   :  { %780 = vmatprep.subr.bf16.mxu1 %v949_v0 }
 0x169   :  { %782 = vmatpush3.bf16.msra.mxu1 %v781_v39 }
 0x16a   :  { %783 = vmatprep.subr.bf16.mxu1 %v949_v0 }
 0x16d   :  { %785 = vmatpush3.bf16.msra.mxu1 %v784_v42 }
 0x16e   :  { %786 = vmatprep.subr.bf16.mxu1 %v949_v0  ;;  %v484_v0 = vld [vmem:[%s1129_s5 + $0x3] ss:$0 sm:$0xff] }
 0x171   :  { %788 = vmatpush3.bf16.msra.mxu1 %v787_v49 }
 0x227   :  { %v270_v6 = vpop.f32.mrb[0].mxu1 }
 0x228   :  { %v271_v7 = vadd.f32 %v482_v1, %v270_v6  ;;  %v622_v8 = vpop.f32.mrb[1].mxu1 }
 0x22a   :  { %v274_v9 = vmul.f32 %v271_v7, %v271_v7 }
 0x22c   :  { %275 = vadd.xlane.f32.xlu0 %v274_v9 }
 0x2b9   :  { %v276_v43 = vpop.xlane.xlu0 %275 }
 0x2ba   :  { %v277_v44 = vmax.f32 %v276_v43, 1e-24 }
 0x2bc   :  { %800 = vrsqrt.f32 %v277_v44 }
 0x2c6   :  { %v801_v45 = vpop.eup %800 }
 0x2c7   :  { %v279_v46 = vmul.f32 %v801_v45, %v271_v7 }
 0x2c9   :  { %656 = vmatmul.mubr.f32.vlgmr.msra.gmra.mrb[2].mxu0 %v279_v46 }
 0x39c   :  { %v367_v51 = vpop.f32.mrb[2].mxu0 }
 0x39d   :  { %v368_v52 = vadd.f32 %v483_v50, %v367_v51  ;;  %v657_v53 = vpop.f32.mrb[3].mxu0 }
 0x39f   :  { %v371_v54 = vmax.f32 %v368_v52, 0.0 }
 0x3a1   :  { %691 = vmatmul.mubr.f32.vlgmr.msra.gmra.mrb[2].mxu1 %v371_v54 }
 0x474   :  { %v459_v55 = vpop.f32.mrb[2].mxu1 }
 0x475   :  { %v460_v56 = vadd.f32 %v484_v0, %v459_v55  ;;  %v692_v57 = vpop.f32.mrb[3].mxu1 }
 0x477   :  { %463 = vst [vmem:[#allocation11] sm:$0xff] %v460_v56 }
 0x478   :  { %923 = shalt.err (!%p920_p2)
}
 0x479   :  { %s924_s20 = scalar_lea.hbm %s1130_s6, 128 }
 0x47a   :  { %p925_p3 = scmp.ne.s32.totalorder %s1130_s6, %s924_s20  ;;  %p928_p4 = scmp.lt.u32.totalorder %s924_s20, %s1130_s6 }
 0x47c   :  { %p930_p5 = pnand %p928_p4, %p925_p3 }
 0x47e   :  { %933 = shalt.err (!%p930_p5)
}
 0x47f   :  { %473 = dma.vmem_to_hbm [thread:$0]  %s471_s16, 128, %s1130_s6, [#allocation4]  }
 0x480   :  { %940 = dma.done.wait [#allocation4], 128  }
 0x481   :  { %941 = vsyncadd [#allocation4], 4294967168 }
 0x482   :  { %477 = vsyncpa [#allocation3], 1 }
 0x483   :  { %478 = vsyncpa [#allocation6], 1 }
 0x484   :  { %479 = vsyncpa [#allocation9], 1 }
 0x485   :  { %480 = vsyncpa [#allocation4], 1 }

</bundles_post_ra>
